<compile_context>
chip_gen: v7x
topology: tpu7x:2x2x1
jax: 0.10.0
libtpu: 0.0.40
codegen_flags: <defaults>
</compile_context>

<pallas_src>
import jax
import jax.numpy as jnp
from jax.experimental import pallas as pl
from jax.experimental.pallas import tpu as pltpu


def _prefix_copy_dma_kernel(w_hbm, o_hbm, sem):
    """Single HBM->HBM DMA: copy weight[:length] into the output buffer."""
    length = o_hbm.shape[0]  # static at trace time
    cp = pltpu.make_async_copy(w_hbm.at[pl.ds(0, length), :], o_hbm, sem)
    cp.start()
    cp.wait()


def learned_positional_embedding(weight: jax.Array, length: int) -> jax.Array:
    """Equivalent of LearnedPositionalEmbedding.forward(length): weight[:length].

    `length` must be a static Python int (it determines the output shape).
    """
    max_seq_len, dim = weight.shape
    assert 0 < length <= max_seq_len, "length must be in (0, max_seq_len]"

    itemsize = jnp.dtype(weight.dtype).itemsize
    bytes_moved = 2 * length * dim * itemsize  # read + write

    return pl.pallas_call(
        _prefix_copy_dma_kernel,
        out_shape=jax.ShapeDtypeStruct((length, dim), weight.dtype),
        in_specs=[pl.BlockSpec(memory_space=pl.ANY)],   # weight stays in HBM
        out_specs=pl.BlockSpec(memory_space=pl.ANY),    # output written in HBM
        scratch_shapes=[pltpu.SemaphoreType.DMA(())],
        cost_estimate=pl.CostEstimate(
            flops=0, transcendentals=0, bytes_accessed=bytes_moved),
    )(weight)

    # TODO(synk): if arbitrary (non-arange) positions are ever needed, switch
    # to a scalar-prefetch gather (PrefetchScalarGridSpec + pl.Element rows)
    # instead of this contiguous-prefix DMA.


if __name__ == "__main__":
    # Small shapes consistent with nn.Embedding(max_seq_len, dimension).
    max_seq_len = 64
    dimension = 128
    length = 8

    # Deterministic parameter init (nn.Embedding default is N(0, 1)).
    key = jax.random.PRNGKey(0)
    weight = jax.random.normal(key, (max_seq_len, dimension), dtype=jnp.float32)

    out = learned_positional_embedding(weight, length)
    out = jax.block_until_ready(out)

    ref = weight[:length]
    assert out.shape == (length, dimension)
    assert out.dtype == weight.dtype
    assert jnp.allclose(out, ref), "mismatch vs reference embedding lookup"

    # Length that is NOT a multiple of 8 (no alignment requirement on the DMA
    # path), which the PyTorch module accepts.
    length2 = 12
    out2 = jax.block_until_ready(learned_positional_embedding(weight, length2))
    assert out2.shape == (length2, dimension)
    assert jnp.allclose(out2, weight[:length2]), "mismatch on ragged length"

    # Full-table length as well.
    out3 = jax.block_until_ready(
        learned_positional_embedding(weight, max_seq_len))
    assert jnp.allclose(out3, weight), "mismatch on full-length copy"

    print("KERNEL_OK")
</pallas_src>

<mosaic_0001>
module attributes {stable_mosaic.version = 11 : i64} {
  func.func @_prefix_copy_dma_kernel(%arg0: memref<64x128xf32, #tpu.memory_space<any>>, %arg1: memref<8x128xf32, #tpu.memory_space<any>>, %arg2: memref<!tpu.dma_semaphore, #tpu.memory_space<semaphore_mem>>) attributes {dimension_semantics = [], scalar_prefetch = 0 : i64, scratch_operands = 1 : i64, tpu.core_type = #tpu.core_type<tc>} {
    %c0_i32 = arith.constant 0 : i32
    %c0_i32_0 = arith.constant 0 : i32
    %0 = tpu.memref_slice %arg0[%c0_i32, %c0_i32_0] : memref<64x128xf32, #tpu.memory_space<any>> -> memref<8x128xf32, #tpu.memory_space<any>>
    tpu.enqueue_dma source(%0 : memref<8x128xf32, #tpu.memory_space<any>>) target(%arg1 : memref<8x128xf32, #tpu.memory_space<any>>) target_semaphore(%arg2 : memref<!tpu.dma_semaphore, #tpu.memory_space<semaphore_mem>>)
    %c0_i32_1 = arith.constant 0 : i32
    %c0_i32_2 = arith.constant 0 : i32
    %1 = tpu.memref_slice %arg0[%c0_i32_1, %c0_i32_2] : memref<64x128xf32, #tpu.memory_space<any>> -> memref<8x128xf32, #tpu.memory_space<any>>
    tpu.wait_dma2 semaphore(%arg2 : memref<!tpu.dma_semaphore, #tpu.memory_space<semaphore_mem>>) src(%1 : memref<8x128xf32, #tpu.memory_space<any>>) dst(%arg1 : memref<8x128xf32, #tpu.memory_space<any>>)
    return
  }
}

</mosaic_0001>

<bundles_post_ra>
// kernel: tpu_custom_call.1
= control target key start
LH: loop header
LB: loop body
LE: loop exit
PB: predicated region body
PF: predicated region fallthrough
CT: control target
= control target key end

     0   :  { %s34_s6 = smov [#allocation2]   ;;  %s35_s7 = smov [#allocation3]   ;;  %s53_s0 = inlined_call_operand.hbm [shape: f32[64,128], index: 0, kind: input, shape index: {}]   ;;  %s54_s1 = inlined_call_operand.hbm [shape: f32[8,128], index: 1, kind: output, shape index: {}]  }
   0x1   :  { %s36_s8 = smov 0  }
   0x2   :  { %18 = dma.general %s53_s0, 128, %s54_s1, %s34_s6, %s35_s7, [#allocation4], %s36_s8, 0  }
   0x3   :  { %32 = dma.done.wait [#allocation2], 128 }
   0x4   :  { %33 = vsyncadd [#allocation2], 4294967168 }
   0x5   :  { %22 = vsyncmov [#allocation2] }
   0x8   :  { %s23_s13 = vpop.sfrf %22 }
   0x9   :  { %p28_p0 = scmp.ne.s32.totalorder %s23_s13, 0 }
   0xb   :  { %27 = shalt.err (%p28_p0)  }

</bundles_post_ra>
